<compile_context>
chip_gen: v7x
topology: tpu7x:2x2x1
jax: 0.10.0
libtpu: 0.0.40
codegen_flags: <defaults>
</compile_context>

<pallas_src>
import functools

import jax
import jax.numpy as jnp
from jax.experimental import pallas as pl
from jax.experimental.pallas import tpu as pltpu


F_IN = 784           # input features (28*28)
H1 = 256             # hidden width
H_OUT = 128          # output width
TILE_B_MAX = 1024    # batch tile for large batches
SMALL_BATCH = 512    # below this, use a single batch tile


def _round_up(n, m):
    return ((n + m - 1) // m) * m


def mlp_kernel(x_ref, w1_ref, b1_ref, ws_ref, bs_ref, w2_ref, b2_ref, o_ref):
    # x_ref: (TILE_B, 784) f32.  Weights bf16, biases f32, output f32.
    # All four matmuls hit the MXU with bf16 inputs / f32 accumulation; the
    # (TILE_B, 256) activations never leave VMEM/vregs.  Bias-add / ReLU stay
    # in f32 (safe on v5e which lacks bf16 VPU).
    x = x_ref[...].astype(jnp.bfloat16)   # in-kernel cast: free VPU filler

    h = jnp.dot(x, w1_ref[...], preferred_element_type=jnp.float32) + b1_ref[...]
    h = jnp.maximum(h, 0.0)

    # shared layer applied twice (same weights, matching the PyTorch module)
    h = jnp.dot(h.astype(jnp.bfloat16), ws_ref[...],
                preferred_element_type=jnp.float32) + bs_ref[...]
    h = jnp.maximum(h, 0.0)
    h = jnp.dot(h.astype(jnp.bfloat16), ws_ref[...],
                preferred_element_type=jnp.float32) + bs_ref[...]
    h = jnp.maximum(h, 0.0)

    out = jnp.dot(h.astype(jnp.bfloat16), w2_ref[...],
                  preferred_element_type=jnp.float32) + b2_ref[...]
    o_ref[...] = out.astype(o_ref.dtype)


def prepare_params(params):
    """One-time prep: cast matmul weights to bf16, keep biases f32 (1, H).

    Hoisted out of the per-call forward so the casts aren't re-run (and
    re-read from HBM) on every invocation.
    """
    w1, b1, ws, bs, w2, b2 = params
    return (
        w1.astype(jnp.bfloat16),
        b1.reshape(1, H1).astype(jnp.float32),
        ws.astype(jnp.bfloat16),
        bs.reshape(1, H1).astype(jnp.float32),
        w2.astype(jnp.bfloat16),
        b2.reshape(1, H_OUT).astype(jnp.float32),
    )


@jax.jit
def net_forward(x, prepared_params):
    """x: (B, 784) float32. prepared_params from prepare_params().

    Returns (B, 128) float32.
    """
    w1, b1, ws, bs, w2, b2 = prepared_params
    B, F = x.shape

    # --- batch tile selection (all static under jit: derived from shapes) ---
    if B < SMALL_BATCH:
        # Single tile; a block dim equal to the full array extent is legal for
        # any B (no multiple-of-8 requirement).
        tile_b = B
    elif B < 2 * TILE_B_MAX:
        # Force >= 2 grid steps so the "parallel" batch axis can shard across
        # v7x's two TensorCores.
        tile_b = _round_up((B + 1) // 2, 8)
    else:
        tile_b = TILE_B_MAX
    b_pad = _round_up(B, tile_b)
    grid = (b_pad // tile_b,)

    # Only pad the batch dim, only when the tile doesn't divide B.
    x_in = x if b_pad == B else jnp.pad(x, ((0, b_pad - B), (0, 0)))

    # Advisory cost estimate (real, unpadded-feature byte/flop counts).
    flops = 2 * b_pad * (F_IN * H1 + 2 * H1 * H1 + H1 * H_OUT)
    bytes_accessed = (
        b_pad * F_IN * 4                                   # x (f32)
        + (w1.size + ws.size + w2.size) * 2                # bf16 weights
        + (b1.size + bs.size + b2.size) * 4                # f32 biases
        + b_pad * H_OUT * 4)                               # out (f32)
    cost = pl.CostEstimate(flops=flops, transcendentals=0,
                           bytes_accessed=bytes_accessed)

    # Constant index_map => weights/biases stay VMEM-resident across the grid.
    resident = lambda shape: pl.BlockSpec(shape, lambda i: tuple(0 for _ in shape))

    out = pl.pallas_call(
        mlp_kernel,
        out_shape=jax.ShapeDtypeStruct((b_pad, H_OUT), jnp.float32),
        grid=grid,
        in_specs=[
            pl.BlockSpec((tile_b, F_IN), lambda i: (i, 0)),  # x tile (pipelined)
            resident((F_IN, H1)),     # w1
            resident((1, H1)),        # b1
            resident((H1, H1)),       # ws
            resident((1, H1)),        # bs
            resident((H1, H_OUT)),    # w2
            resident((1, H_OUT)),     # b2
        ],
        out_specs=pl.BlockSpec((tile_b, H_OUT), lambda i: (i, 0)),
        compiler_params=pltpu.CompilerParams(
            dimension_semantics=("parallel",),
            vmem_limit_bytes=32 << 20,
        ),
        cost_estimate=cost,
    )(x_in, w1, b1, ws, bs, w2, b2)

    return out[:B]


def init_params(key):
    """Deterministic init matching PyTorch nn.Linear default U(-1/sqrt(fan_in), ...)."""
    def linear(k, fan_in, fan_out):
        kw, kb = jax.random.split(k)
        bound = 1.0 / jnp.sqrt(fan_in)
        w = jax.random.uniform(kw, (fan_in, fan_out), jnp.float32, -bound, bound)
        b = jax.random.uniform(kb, (1, fan_out), jnp.float32, -bound, bound)
        return w, b

    k1, k2, k3 = jax.random.split(key, 3)
    w1, b1 = linear(k1, 784, 256)   # nn.Linear(784, 256)
    ws, bs = linear(k2, 256, 256)   # shared nn.Linear(256, 256) (used twice)
    w2, b2 = linear(k3, 256, 128)   # nn.Linear(256, 128)
    return (w1, b1, ws, bs, w2, b2)


def reference_forward(x, params):
    w1, b1, ws, bs, w2, b2 = params
    h = jnp.maximum(x @ w1 + b1, 0.0)
    h = jnp.maximum(h @ ws + bs, 0.0)
    h = jnp.maximum(h @ ws + bs, 0.0)
    return h @ w2 + b2


if __name__ == "__main__":
    key = jax.random.PRNGKey(0)
    kx, kp = jax.random.split(key)

    B = 2
    x = jax.random.normal(kx, (B, 784), jnp.float32)
    params = init_params(kp)
    prepared = prepare_params(params)   # one-time bf16 weight prep

    out = net_forward(x, prepared)
    out = jax.block_until_ready(out)

    ref = reference_forward(x, params)
    assert out.shape == (B, 128)
    # bf16 matmul inputs with f32 accumulation -> looser tolerance vs f32 ref.
    assert jnp.allclose(out, ref, atol=3e-2, rtol=3e-2), (
        float(jnp.max(jnp.abs(out - ref))))

    print("KERNEL_OK")
</pallas_src>

<mosaic_0001>
module attributes {stable_mosaic.version = 11 : i64} {
  func.func @mlp_kernel(%arg0: i32, %arg1: memref<2x784xf32, #tpu.memory_space<vmem>>, %arg2: memref<784x256xbf16, #tpu.memory_space<vmem>>, %arg3: memref<1x256xf32, #tpu.memory_space<vmem>>, %arg4: memref<256x256xbf16, #tpu.memory_space<vmem>>, %arg5: memref<1x256xf32, #tpu.memory_space<vmem>>, %arg6: memref<256x128xbf16, #tpu.memory_space<vmem>>, %arg7: memref<1x128xf32, #tpu.memory_space<vmem>>, %arg8: memref<2x128xf32, #tpu.memory_space<vmem>>) attributes {dimension_semantics = [#tpu.dimension_semantics<parallel>], iteration_bounds = array<i64: 1>, scalar_prefetch = 0 : i64, scratch_operands = 0 : i64, tpu.core_type = #tpu.core_type<tc>, window_params = [{transform_indices = @transform_0, window_bounds = array<i64: 2, 784>}, {pipeline_mode = #tpu.pipeline_mode<synchronous>, transform_indices = @transform_1, window_bounds = array<i64: 784, 256>}, {pipeline_mode = #tpu.pipeline_mode<synchronous>, transform_indices = @transform_2, window_bounds = array<i64: 1, 256>}, {pipeline_mode = #tpu.pipeline_mode<synchronous>, transform_indices = @transform_3, window_bounds = array<i64: 256, 256>}, {pipeline_mode = #tpu.pipeline_mode<synchronous>, transform_indices = @transform_4, window_bounds = array<i64: 1, 256>}, {pipeline_mode = #tpu.pipeline_mode<synchronous>, transform_indices = @transform_5, window_bounds = array<i64: 256, 128>}, {pipeline_mode = #tpu.pipeline_mode<synchronous>, transform_indices = @transform_6, window_bounds = array<i64: 1, 128>}, {transform_indices = @transform_7, window_bounds = array<i64: 2, 128>}]} {
    %c0 = arith.constant 0 : index
    %c0_0 = arith.constant 0 : index
    %0 = vector.load %arg1[%c0, %c0_0] : memref<2x784xf32, #tpu.memory_space<vmem>>, vector<2x784xf32>
    %1 = arith.truncf %0 : vector<2x784xf32> to vector<2x784xbf16>
    %c0_1 = arith.constant 0 : index
    %c0_2 = arith.constant 0 : index
    %2 = vector.load %arg2[%c0_1, %c0_2] : memref<784x256xbf16, #tpu.memory_space<vmem>>, vector<784x256xbf16>
    %cst = arith.constant dense<0.000000e+00> : vector<2x256xf32>
    %3 = tpu.matmul %1, %2, %cst {dimension_numbers = #tpu.dot_dimension_numbers<[1], [0], [0], [1], [0, 0, 1, 1], [], []>} : vector<2x784xbf16>, vector<784x256xbf16>, vector<2x256xf32> -> vector<2x256xf32>
    %c0_3 = arith.constant 0 : index
    %c0_4 = arith.constant 0 : index
    %4 = vector.load %arg3[%c0_3, %c0_4] : memref<1x256xf32, #tpu.memory_space<vmem>>, vector<1x256xf32>
    %5 = vector.broadcast %4 : vector<1x256xf32> to vector<2x256xf32>
    %6 = arith.addf %3, %5 : vector<2x256xf32>
    %cst_5 = arith.constant 0.000000e+00 : f32
    %7 = vector.broadcast %cst_5 : f32 to vector<2x256xf32>
    %8 = arith.maximumf %6, %7 : vector<2x256xf32>
    %9 = arith.truncf %8 : vector<2x256xf32> to vector<2x256xbf16>
    %c0_6 = arith.constant 0 : index
    %c0_7 = arith.constant 0 : index
    %10 = vector.load %arg4[%c0_6, %c0_7] : memref<256x256xbf16, #tpu.memory_space<vmem>>, vector<256x256xbf16>
    %cst_8 = arith.constant dense<0.000000e+00> : vector<2x256xf32>
    %11 = tpu.matmul %9, %10, %cst_8 {dimension_numbers = #tpu.dot_dimension_numbers<[1], [0], [0], [1], [0, 0, 1, 1], [], []>} : vector<2x256xbf16>, vector<256x256xbf16>, vector<2x256xf32> -> vector<2x256xf32>
    %c0_9 = arith.constant 0 : index
    %c0_10 = arith.constant 0 : index
    %12 = vector.load %arg5[%c0_9, %c0_10] : memref<1x256xf32, #tpu.memory_space<vmem>>, vector<1x256xf32>
    %13 = vector.broadcast %12 : vector<1x256xf32> to vector<2x256xf32>
    %14 = arith.addf %11, %13 : vector<2x256xf32>
    %cst_11 = arith.constant 0.000000e+00 : f32
    %15 = vector.broadcast %cst_11 : f32 to vector<2x256xf32>
    %16 = arith.maximumf %14, %15 : vector<2x256xf32>
    %17 = arith.truncf %16 : vector<2x256xf32> to vector<2x256xbf16>
    %c0_12 = arith.constant 0 : index
    %c0_13 = arith.constant 0 : index
    %18 = vector.load %arg4[%c0_12, %c0_13] : memref<256x256xbf16, #tpu.memory_space<vmem>>, vector<256x256xbf16>
    %cst_14 = arith.constant dense<0.000000e+00> : vector<2x256xf32>
    %19 = tpu.matmul %17, %18, %cst_14 {dimension_numbers = #tpu.dot_dimension_numbers<[1], [0], [0], [1], [0, 0, 1, 1], [], []>} : vector<2x256xbf16>, vector<256x256xbf16>, vector<2x256xf32> -> vector<2x256xf32>
    %c0_15 = arith.constant 0 : index
    %c0_16 = arith.constant 0 : index
    %20 = vector.load %arg5[%c0_15, %c0_16] : memref<1x256xf32, #tpu.memory_space<vmem>>, vector<1x256xf32>
    %21 = vector.broadcast %20 : vector<1x256xf32> to vector<2x256xf32>
    %22 = arith.addf %19, %21 : vector<2x256xf32>
    %cst_17 = arith.constant 0.000000e+00 : f32
    %23 = vector.broadcast %cst_17 : f32 to vector<2x256xf32>
    %24 = arith.maximumf %22, %23 : vector<2x256xf32>
    %25 = arith.truncf %24 : vector<2x256xf32> to vector<2x256xbf16>
    %c0_18 = arith.constant 0 : index
    %c0_19 = arith.constant 0 : index
    %26 = vector.load %arg6[%c0_18, %c0_19] : memref<256x128xbf16, #tpu.memory_space<vmem>>, vector<256x128xbf16>
    %cst_20 = arith.constant dense<0.000000e+00> : vector<2x128xf32>
    %27 = tpu.matmul %25, %26, %cst_20 {dimension_numbers = #tpu.dot_dimension_numbers<[1], [0], [0], [1], [0, 0, 1, 1], [], []>} : vector<2x256xbf16>, vector<256x128xbf16>, vector<2x128xf32> -> vector<2x128xf32>
    %c0_21 = arith.constant 0 : index
    %c0_22 = arith.constant 0 : index
    %28 = vector.load %arg7[%c0_21, %c0_22] : memref<1x128xf32, #tpu.memory_space<vmem>>, vector<1x128xf32>
    %29 = vector.broadcast %28 : vector<1x128xf32> to vector<2x128xf32>
    %30 = arith.addf %27, %29 : vector<2x128xf32>
    %c0_23 = arith.constant 0 : index
    %c0_24 = arith.constant 0 : index
    %31 = vector.load %arg8[%c0_23, %c0_24] : memref<2x128xf32, #tpu.memory_space<vmem>>, vector<2x128xf32>
    tpu.vector_store %arg8[%c0_23, %c0_24], %30 {strides = array<i32>} : memref<2x128xf32, #tpu.memory_space<vmem>>, vector<2x128xf32>,
    return
  }
  func.func @transform_0(%arg0: i32) -> (i32, i32) {
    %c0_i32 = arith.constant 0 : i32
    %c0_i32_0 = arith.constant 0 : i32
    return %arg0, %c0_i32 : i32, i32
  }
  func.func @transform_1(%arg0: i32) -> (i32, i32) {
    %c0_i32 = arith.constant 0 : i32
    %c0_i32_0 = arith.constant 0 : i32
    %c0_i32_1 = arith.constant 0 : i32
    return %c0_i32, %c0_i32_0 : i32, i32
  }
  func.func @transform_2(%arg0: i32) -> (i32, i32) {
    %c0_i32 = arith.constant 0 : i32
    %c0_i32_0 = arith.constant 0 : i32
    %c0_i32_1 = arith.constant 0 : i32
    return %c0_i32, %c0_i32_0 : i32, i32
  }
  func.func @transform_3(%arg0: i32) -> (i32, i32) {
    %c0_i32 = arith.constant 0 : i32
    %c0_i32_0 = arith.constant 0 : i32
    %c0_i32_1 = arith.constant 0 : i32
    return %c0_i32, %c0_i32_0 : i32, i32
  }
  func.func @transform_4(%arg0: i32) -> (i32, i32) {
    %c0_i32 = arith.constant 0 : i32
    %c0_i32_0 = arith.constant 0 : i32
    %c0_i32_1 = arith.constant 0 : i32
    return %c0_i32, %c0_i32_0 : i32, i32
  }
  func.func @transform_5(%arg0: i32) -> (i32, i32) {
    %c0_i32 = arith.constant 0 : i32
    %c0_i32_0 = arith.constant 0 : i32
    %c0_i32_1 = arith.constant 0 : i32
    return %c0_i32, %c0_i32_0 : i32, i32
  }
  func.func @transform_6(%arg0: i32) -> (i32, i32) {
    %c0_i32 = arith.constant 0 : i32
    %c0_i32_0 = arith.constant 0 : i32
    %c0_i32_1 = arith.constant 0 : i32
    return %c0_i32, %c0_i32_0 : i32, i32
  }
  func.func @transform_7(%arg0: i32) -> (i32, i32) {
    %c0_i32 = arith.constant 0 : i32
    %c0_i32_0 = arith.constant 0 : i32
    return %arg0, %c0_i32 : i32, i32
  }
}

</mosaic_0001>

<bundles_post_ra>
// kernel: net_forward.1
= control target key start
LH: loop header
LB: loop body
LE: loop exit
PB: predicated region body
PF: predicated region fallthrough
CT: control target
= control target key end

     0   :  { %12 = vsyncpa [#allocation3], 0  ;;  %s2181_s0 = inlined_call_operand.hbm [shape: f32[2,784], index: 0, kind: input, shape index: {}]   ;;  %s2182_s1 = inlined_call_operand.hbm [shape: bf16[784,256], index: 1, kind: input, shape index: {}]   ;;  %s2183_s2 = inlined_call_operand.vmem [shape: f32[1,256], index: 2, kind: input, shape index: {}]   ;;  %s2184_s3 = inlined_call_operand.hbm [shape: bf16[256,256], index: 3, kind: input, shape index: {}]   ;;  %s2185_s4 = inlined_call_operand.vmem [shape: f32[1,256], index: 4, kind: input, shape index: {}]   ;;  %s2186_s5 = inlined_call_operand.hbm [shape: bf16[256,128], index: 5, kind: input, shape index: {}]   ;;  %s2187_s6 = inlined_call_operand.vmem [shape: f32[1,128], index: 6, kind: input, shape index: {}]   ;;  %s2188_s7 = inlined_call_operand.hbm [shape: f32[2,128], index: 7, kind: output, shape index: {}]  }
   0x1   :  { %13 = vsyncpa [#allocation6], 0 }
   0x2   :  { %14 = vsyncpa [#allocation9], 0 }
   0x3   :  { %15 = vsyncpa [#allocation4], 0  ;;  %s1915_s24 = smov [#allocation5]   ;;  %s1797_s28 = scalar_lea.hbm %s2182_s1, 12544 }
   0x4   :  { %s31_s25 = sshll.u32 %s1915_s24, 4  ;;  %p1798_p0 = scmp.ne.s32.totalorder %s2182_s1, %s1797_s28  ;;  %s32_s25 = int_to_ptr.vmem [resolvable:$true] %s31_s25 }
   0x5   :  { %p1801_p1 = scmp.lt.u32.totalorder %s1797_s28, %s2182_s1 }
   0x7   :  { %p1803_p2 = pnand %p1801_p1, %p1798_p0 }
   0x9   :  { %1806 = shalt.err (!%p1803_p2)
}
   0xa   :  { %s1807_s10 = scalar_lea.vmem %s32_s25, 12544  ;;  %p1812_p4 = scmp.lt.s32.totalorder %s32_s25, %s32_s25 }
   0xb   :  { %p1808_p3 = scmp.ne.s32.totalorder %s32_s25, %s1807_s10  ;;  %p1813_p5 = scmp.lt.s32.totalorder %s1807_s10, %s1807_s10 }
   0xd   :  { %p1814_p6 = por %p1813_p5, %p1812_p4 }
   0xf   :  { %p1815_p7 = pnand %p1814_p6, %p1808_p3 }
  0x11   :  { %1818 = shalt.err (!%p1815_p7)
}
  0x12   :  { %s1916_s11 = smov 128   ;;  %s1917_s12 = smov 8  }
  0x13   :  { %37 = dma.hbm_to_vmem [thread:$0]  %s2182_s1, 12544, %s32_s25, [#allocation6], %s1916_s11, %s1916_s11, %s1917_s12  }
  0x14   :  { %s1918_s15 = smov [#allocation2]   ;;  %s1919_s17 = smov [#allocation7]  }
  0x15   :  { %s22_s16 = sshll.u32 %s1918_s15, 4  ;;  %s45_s18 = sshll.u32 %s1919_s17, 4  ;;  %s23_s16 = int_to_ptr.vmem [resolvable:$true] %s22_s16  ;;  %s46_s18 = int_to_ptr.vmem [resolvable:$true] %s45_s18 }
  0x16   :  { %s1819_s21 = scalar_lea.hbm %s2181_s0, 224 }
  0x17   :  { %p1820_p8 = scmp.ne.s32.totalorder %s2181_s0, %s1819_s21  ;;  %p1823_p9 = scmp.lt.u32.totalorder %s1819_s21, %s2181_s0 }
  0x19   :  { %p1825_p10 = pnand %p1823_p9, %p1820_p8 }
  0x1b   :  { %1828 = shalt.err (!%p1825_p10)
}
  0x1c   :  { %s1829_s1 = scalar_lea.vmem %s23_s16, 224  ;;  %p1834_p12 = scmp.lt.s32.totalorder %s23_s16, %s23_s16 }
  0x1d   :  { %p1830_p11 = scmp.ne.s32.totalorder %s23_s16, %s1829_s1  ;;  %p1835_p13 = scmp.lt.s32.totalorder %s1829_s1, %s1829_s1 }
  0x1f   :  { %p1836_p0 = por %p1835_p13, %p1834_p12 }
  0x21   :  { %p1837_p1 = pnand %p1836_p0, %p1830_p11 }
  0x23   :  { %1840 = shalt.err (!%p1837_p1)
}
  0x24   :  { %25 = dma.hbm_to_vmem [thread:$0]  %s2181_s0, 224, %s23_s16, [#allocation3]  }
  0x25   :  { %s1841_s30 = scalar_lea.hbm %s2184_s3, 4096 }
  0x26   :  { %p1842_p2 = scmp.ne.s32.totalorder %s2184_s3, %s1841_s30  ;;  %p1845_p3 = scmp.lt.u32.totalorder %s1841_s30, %s2184_s3 }
  0x28   :  { %p1847_p4 = pnand %p1845_p3, %p1842_p2 }
  0x2a   :  { %1850 = shalt.err (!%p1847_p4)
}
  0x2b   :  { %s1851_s14 = scalar_lea.vmem %s46_s18, 4096  ;;  %p1856_p6 = scmp.lt.s32.totalorder %s46_s18, %s46_s18 }
  0x2c   :  { %p1852_p5 = scmp.ne.s32.totalorder %s46_s18, %s1851_s14  ;;  %p1857_p7 = scmp.lt.s32.totalorder %s1851_s14, %s1851_s14 }
  0x2e   :  { %p1858_p8 = por %p1857_p7, %p1856_p6 }
  0x30   :  { %p1859_p9 = pnand %p1858_p8, %p1852_p5 }
  0x32   :  { %1862 = shalt.err (!%p1859_p9)
}
  0x33   :  { %51 = dma.hbm_to_vmem [thread:$0]  %s2184_s3, 4096, %s46_s18, [#allocation6], %s1916_s11, %s1916_s11, %s1917_s12  }
  0x34   :  { %s1920_s16 = smov [#allocation8]   ;;  %s1863_s21 = scalar_lea.hbm %s2186_s5, 2048 }
  0x35   :  { %s59_s17 = sshll.u32 %s1920_s16, 4  ;;  %p1864_p10 = scmp.ne.s32.totalorder %s2186_s5, %s1863_s21  ;;  %s60_s17 = int_to_ptr.vmem [resolvable:$true] %s59_s17 }
  0x36   :  { %p1867_p11 = scmp.lt.u32.totalorder %s1863_s21, %s2186_s5 }
  0x38   :  { %p1869_p12 = pnand %p1867_p11, %p1864_p10 }
  0x3a   :  { %1872 = shalt.err (!%p1869_p12)
}
  0x3b   :  { %s1873_s1 = scalar_lea.vmem %s60_s17, 2048  ;;  %p1878_p0 = scmp.lt.s32.totalorder %s60_s17, %s60_s17 }
  0x3c   :  { %p1874_p13 = scmp.ne.s32.totalorder %s60_s17, %s1873_s1  ;;  %p1879_p1 = scmp.lt.s32.totalorder %s1873_s1, %s1873_s1 }
  0x3e   :  { %p1880_p2 = por %p1879_p1, %p1878_p0 }
  0x40   :  { %p1881_p3 = pnand %p1880_p2, %p1874_p13 }
  0x42   :  { %1884 = shalt.err (!%p1881_p3)
}
  0x43   :  { %s1921_s3 = smov 64   ;;  %s1922_s11 = smov 4  }
  0x44   :  { %65 = dma.hbm_to_vmem [thread:$0]  %s2186_s5, 2048, %s60_s17, [#allocation9], %s1921_s3, %s1921_s3, %s1922_s11  }
  0x45   :  { %1907 = dma.done.wait [#allocation3], 224  }
  0x46   :  { %1908 = vsyncadd [#allocation3], 4294967072 }
  0x47   :  { %1909 = dma.done.wait [#allocation6], 16640  }
  0x48   :  { %1910 = vsyncadd [#allocation6], 4294950656 }
  0x49   :  { %1911 = dma.done.wait [#allocation9], 2048  }
  0x4a   :  { %1912 = vsyncadd [#allocation9], 4294965248  ;;  %v1584_v0 = vld [vmem:[#allocation5 + $0x4] ss:$8 sps:$4 sm:$0xff]   ;;  %v1586_v1 = vld [vmem:[#allocation5] ss:$8 sps:$4 sm:$0xff]   ;;  %v89_v9 = vlaneseq }
  0x4b   :  { %736 = vmatprep.subr.bf16.mxu0 %v1584_v0  ;;  %v1587_v2 = vld [vmem:[#allocation5 + $0x14] ss:$8 sps:$4 sm:$0xff]   ;;  %v1589_v3 = vld [vmem:[#allocation5 + $0x10] ss:$8 sps:$4 sm:$0xff]   ;;  %v1590_v4 = vld [vmem:[#allocation5 + $0x24] ss:$8 sps:$4 sm:$0xff]  }
  0x4c   :  { %737 = vmatpush1.bf16.msra.mxu0 %v1586_v1  ;;  %v1592_v5 = vld [vmem:[#allocation5 + $0x20] ss:$8 sps:$4 sm:$0xff]   ;;  %v1593_v6 = vld [vmem:[#allocation5 + $0x34] ss:$8 sps:$4 sm:$0xff]   ;;  %v1923_v7 = vmov 1983009808  }
  0x4d   :  { %738 = vmatprep.subr.bf16.mxu0 %v1587_v2  ;;  %v87_v8 = vunpack.c.l.s4 %v1923_v7  ;;  %v1595_v10 = vld [vmem:[#allocation5 + $0x30] ss:$8 sps:$4 sm:$0xff]   ;;  %v1596_v11 = vld [vmem:[#allocation5 + $0x44] ss:$8 sps:$4 sm:$0xff]   ;;  %v2020_v13 = vshrl.u32 %v89_v9, 7  ;;  %v1924_v51 = vmov 0  }
  0x4e   :  { %v1598_v14 = vld [vmem:[#allocation5 + $0x40] ss:$8 sps:$4 sm:$0xff]   ;;  %v1599_v15 = vld [vmem:[#allocation5 + $0x54] ss:$8 sps:$4 sm:$0xff]   ;;  %v1601_v17 = vld [vmem:[#allocation5 + $0x50] ss:$8 sps:$4 sm:$0xff]   ;;  %891 = vmatprep.mubr.bf16.mxu1 %v1924_v51 }
  0x4f   :  { %v88_v12 = vunpack.c.0.s8 %v87_v8  ;;  %v1602_v18 = vld [vmem:[#allocation5 + $0x64] ss:$8 sps:$4 sm:$0xff]   ;;  %v81_v19 = vld [vmem:[#allocation2] sm:$0xff]  ;;  %v1604_v21 = vld [vmem:[#allocation5 + $0x60] ss:$8 sps:$4 sm:$0xff]   ;;  %vm732_vm0 = vcmask 130048  }
  0x50   :  { %739 = vmatpush1.bf16.msra.mxu0 %v1589_v3  ;;  %v1605_v22 = vld [vmem:[#allocation5 + $0x74] ss:$8 sps:$4 sm:$0xff]   ;;  %v1607_v25 = vld [vmem:[#allocation5 + $0x70] ss:$8 sps:$4 sm:$0xff]   ;;  %v1608_v26 = vld [vmem:[#allocation5 + $0x84] ss:$8 sps:$4 sm:$0xff]   ;;  %v85_v38 = vcombine.high %v81_v19, %v81_v19 }
  0x51   :  { %740 = vmatprep.subr.bf16.mxu0 %v1590_v4  ;;  %v2023_v16 = vsub.s32 %v88_v12, %v2020_v13  ;;  %v1610_v27 = vld [vmem:[#allocation5 + $0x80] ss:$8 sps:$4 sm:$0xff]   ;;  %v1611_v28 = vld [vmem:[#allocation5 + $0x94] ss:$8 sps:$4 sm:$0xff]   ;;  %v1613_v29 = vld [vmem:[#allocation5 + $0x90] ss:$8 sps:$4 sm:$0xff]  }
  0x52   :  { %v1614_v30 = vld [vmem:[#allocation5 + $0xa4] ss:$8 sps:$4 sm:$0xff]   ;;  %v1616_v31 = vld [vmem:[#allocation5 + $0xa0] ss:$8 sps:$4 sm:$0xff]   ;;  %v1617_v32 = vld [vmem:[#allocation5 + $0xb4] ss:$8 sps:$4 sm:$0xff]  }
  0x53   :  { %v92_v20 = vrot.slane %v81_v19, %v2023_v16  ;;  %v1619_v33 = vld [vmem:[#allocation5 + $0xb0] ss:$8 sps:$4 sm:$0xff]   ;;  %v1620_v34 = vld [vmem:[#allocation5 + $0xc4] ss:$8 sps:$4 sm:$0xff]   ;;  %v1622_v35 = vld [vmem:[#allocation5 + $0xc0] ss:$8 sps:$4 sm:$0xff]   ;;  %v2027_v41 = vrot.slane %v85_v38, %v2023_v16 }
  0x54   :  { %741 = vmatpush1.bf16.msra.mxu0 %v1592_v5  ;;  %v1623_v36 = vld [vmem:[#allocation5 + $0xd4] ss:$8 sps:$4 sm:$0xff]   ;;  %v1625_v37 = vld [vmem:[#allocation5 + $0xd0] ss:$8 sps:$4 sm:$0xff]   ;;  %v1626_v39 = vld [vmem:[#allocation5 + $0xe4] ss:$8 sps:$4 sm:$0xff]  }
  0x55   :  { %742 = vmatprep.subr.bf16.mxu0 %v1593_v6  ;;  %v100_v23 = vcombine.high %v92_v20, %v92_v20  ;;  %v1628_v40 = vld [vmem:[#allocation5 + $0xe0] ss:$8 sps:$4 sm:$0xff]   ;;  %v1629_v42 = vld [vmem:[#allocation5 + $0xf4] ss:$8 sps:$4 sm:$0xff]   ;;  %v1631_v43 = vld [vmem:[#allocation5 + $0xf0] ss:$8 sps:$4 sm:$0xff]   ;;  %v101_v44 = vcombine.high %v2027_v41, %v2027_v41  ;;  %v125_v47 = vpack.c.bf16 %v92_v20, %v92_v20 }
  0x56   :  { %v1635_v45 = vld [vmem:[#allocation5 + $0x104] ss:$8 sps:$4 sm:$0xff]   ;;  %v1633_v46 = vld [vmem:[#allocation5 + $0x100] ss:$8 sps:$4 sm:$0xff]   ;;  %v1638_v50 = vld [vmem:[#allocation5 + $0x114] ss:$8 sps:$4 sm:$0xff]  }
  0x57   :  { %v126_v24 = vpack.c.bf16 %v100_v23, %v100_v23  ;;  %v128_v48 = vpack.c.bf16 %v101_v44, %v101_v44  ;;  %v1726_v49 = vld [vmem:[#allocation5 + $0x304] ss:$8 sps:$4 sm:$0xff]   ;;  %v1731_v52 = vld [vmem:[#allocation5 + $0x300] ss:$8 sps:$4 sm:$0xff]   ;;  %v2031_v53 = vld [vmem:[#allocation2 + $0x8] sm:$0x3f] }
  0x58   :  { %743 = vmatpush1.bf16.msra.mxu0 %v1595_v10  ;;  %859 = vmatprep.subr.bf16.mxu1 %v1726_v49  ;;  %v1636_v54 = vld [vmem:[#allocation5 + $0x110] ss:$8 sps:$4 sm:$0xff]   ;;  %v102_v55 = vcombine.high %v2031_v53, %v2031_v53  ;;  %v2035_v56 = vld [vmem:[#allocation7 + $0x4] ss:$8 sps:$4 sm:$0xff]   ;;  %v1641_v57 = vld [vmem:[#allocation5 + $0x124] ss:$8 sps:$4 sm:$0xff]   ;;  %v2115_v49 = vrot.slane %v2031_v53, %v2023_v16 }
  0x59   :  { %744 = vmatprep.subr.bf16.mxu0 %v1596_v11  ;;  %768 = vmatprep.mubr.bf16.mxu0 %v126_v24  ;;  %v2038_v59 = vld [vmem:[#allocation7] ss:$8 sps:$4 sm:$0xff]   ;;  %v2041_v61 = vld [vmem:[#allocation7 + $0x14] ss:$8 sps:$4 sm:$0xff]   ;;  %v1639_v62 = vld [vmem:[#allocation5 + $0x120] ss:$8 sps:$4 sm:$0xff]  }
  0x5a   :  { %860 = vmatpush1.bf16.msra.mxu1 %v1731_v52  ;;  %v116_v58 = vrot.slane %v102_v55, %v2023_v16  ;;  %v1644_v63 = vld [vmem:[#allocation5 + $0x134] ss:$8 sps:$4 sm:$0xff]   ;;  %v2044_v0 = vld [vmem:[#allocation7 + $0x10] ss:$8 sps:$4 sm:$0xff]   ;;  %v1642_v2 = vld [vmem:[#allocation5 + $0x130] ss:$8 sps:$4 sm:$0xff]   ;;  %v117_v52 = vcombine.high %v2115_v49, %v2115_v49  ;;  %v127_v55 = vpack.c.bf16 %v2027_v41, %v2027_v41 }
  0x5b   :  { %1108 = vmatprep.subr.bf16.mxu1 %v2035_v56  ;;  %v2047_v1 = vld [vmem:[#allocation7 + $0x24] ss:$8 sps:$4 sm:$0xff]   ;;  %v1647_v3 = vld [vmem:[#allocation5 + $0x144] ss:$8 sps:$4 sm:$0xff]   ;;  %v2050_v4 = vld [vmem:[#allocation7 + $0x20] ss:$8 sps:$4 sm:$0xff]  }
  0x5c   :  { %745 = vmatpush1.bf16.msra.mxu0 %v1598_v14  ;;  %v131_v60 = vpack.c.bf16 %v116_v58, %v116_v58  ;;  %v2053_v5 = vld [vmem:[#allocation7 + $0x34] ss:$8 sps:$4 sm:$0xff]   ;;  %v1645_v6 = vld [vmem:[#allocation5 + $0x140] ss:$8 sps:$4 sm:$0xff]   ;;  %v1650_v7 = vld [vmem:[#allocation5 + $0x154] ss:$8 sps:$4 sm:$0xff]   ;;  %v130_v58 = vpack.c.bf16 %v117_v52, %v117_v52 }
  0x5d   :  { %746 = vmatprep.subr.bf16.mxu0 %v1599_v15  ;;  %v1648_v8 = vld [vmem:[#allocation5 + $0x150] ss:$8 sps:$4 sm:$0xff]   ;;  %v2056_v9 = vld [vmem:[#allocation7 + $0x30] ss:$8 sps:$4 sm:$0xff]   ;;  %v1653_v10 = vld [vmem:[#allocation5 + $0x164] ss:$8 sps:$4 sm:$0xff]  }
  0x5e   :  { %1489 = vmatmul.mubr.msk.bf16.vlgmr.msra.gmra.mrb[0].mxu1 %vm732_vm0, %v131_v60  ;;  %v2059_v11 = vld [vmem:[#allocation7 + $0x44] ss:$8 sps:$4 sm:$0xff]   ;;  %v2061_v12 = vld [vmem:[#allocation7 + $0x40] ss:$8 sps:$4 sm:$0xff]   ;;  %v2063_v14 = vld [vmem:[#allocation7 + $0x54] ss:$8 sps:$4 sm:$0xff]  }
  0x5f   :  { %1109 = vmatpush1.bf16.msra.mxu1 %v2038_v59  ;;  %v1651_v15 = vld [vmem:[#allocation5 + $0x160] ss:$8 sps:$4 sm:$0xff]   ;;  %v2069_v19 = vld [vmem:[#allocation7 + $0x64] ss:$8 sps:$4 sm:$0xff]   ;;  %v1654_v20 = vld [vmem:[#allocation5 + $0x170] ss:$8 sps:$4 sm:$0xff]  }
  0x60   :  { %747 = vmatpush1.bf16.msra.mxu0 %v1601_v17  ;;  %1110 = vmatprep.subr.bf16.mxu1 %v2041_v61  ;;  %v1656_v17 = vld [vmem:[#allocation5 + $0x174] ss:$8 sps:$4 sm:$0xff]   ;;  %v2075_v23 = vld [vmem:[#allocation7 + $0x74] ss:$8 sps:$4 sm:$0xff]   ;;  %v1657_v24 = vld [vmem:[#allocation5 + $0x180] ss:$8 sps:$4 sm:$0xff]  }
  0x61   :  { %748 = vmatprep.subr.bf16.mxu0 %v1602_v18  ;;  %v2067_v18 = vld [vmem:[#allocation7 + $0x50] ss:$8 sps:$4 sm:$0xff]   ;;  %v2098_v38 = vld [vmem:[#allocation7 + $0xa0] ss:$8 sps:$4 sm:$0xff]   ;;  %v2107_v44 = vld [vmem:[#allocation7 + $0xc4] ss:$8 sps:$4 sm:$0xff]  }
  0x62   :  { %v1678_v51 = vld [vmem:[#allocation5 + $0x1f0] ss:$8 sps:$4 sm:$0xff]   ;;  %v1686_v16 = vld [vmem:[#allocation5 + $0x214] ss:$8 sps:$4 sm:$0xff]   ;;  %v1689_v60 = vld [vmem:[#allocation5 + $0x224] ss:$8 sps:$4 sm:$0xff]  }
  0x63   :  { %1111 = vmatpush1.bf16.msra.mxu1 %v2044_v0  ;;  %v1684_v53 = vld [vmem:[#allocation5 + $0x210] ss:$8 sps:$4 sm:$0xff]   ;;  %v1693_v41 = vld [vmem:[#allocation5 + $0x240] ss:$8 sps:$4 sm:$0xff]   ;;  %s1925_s29 = smov [#allocation10]  }
  0x64   :  { %749 = vmatpush1.bf16.msra.mxu0 %v1604_v21  ;;  %1112 = vmatprep.subr.bf16.mxu1 %v2047_v1  ;;  %v1659_v21 = vld [vmem:[#allocation5 + $0x184] ss:$8 sps:$4 sm:$0xff]   ;;  %v1728_v52 = vld [vmem:[#allocation5 + $0x2f0] ss:$8 sps:$4 sm:$0xff]   ;;  %s1380_s30 = sshll.u32 %s1925_s29, 4  ;;  %s1381_s30 = int_to_ptr.vmem [resolvable:$true] %s1380_s30 }
  0x65   :  { %750 = vmatprep.subr.bf16.mxu0 %v1605_v22  ;;  %v2073_v22 = vld [vmem:[#allocation7 + $0x60] ss:$8 sps:$4 sm:$0xff]   ;;  %s1885_s8 = scalar_lea.vmem %s1381_s30, 32  ;;  %p1890_p5 = scmp.lt.s32.totalorder %s1381_s30, %s1381_s30 }
  0x66   :  { %p1886_p4 = scmp.ne.s32.totalorder %s1381_s30, %s1885_s8  ;;  %p1891_p6 = scmp.lt.s32.totalorder %s1885_s8, %s1885_s8 }
  0x67   :  { %1113 = vmatpush1.bf16.msra.mxu1 %v2050_v4 }
  0x68   :  { %751 = vmatpush1.bf16.msra.mxu0 %v1607_v25  ;;  %1114 = vmatprep.subr.bf16.mxu1 %v2053_v5  ;;  %v1662_v25 = vld [vmem:[#allocation5 + $0x194] ss:$8 sps:$4 sm:$0xff]   ;;  %p1892_p7 = por %p1891_p6, %p1890_p5 }
  0x69   :  { %752 = vmatprep.subr.bf16.mxu0 %v1608_v26  ;;  %v2080_v26 = vld [vmem:[#allocation7 + $0x70] ss:$8 sps:$4 sm:$0xff]  }
  0x6a   :  { %p1893_p8 = pnand %p1892_p7, %p1886_p4 }
  0x6b   :  { %1115 = vmatpush1.bf16.msra.mxu1 %v2056_v9 }
  0x6c   :  { %753 = vmatpush1.bf16.msra.mxu0 %v1610_v27  ;;  %1116 = vmatprep.subr.bf16.mxu1 %v2059_v11  ;;  %v2083_v27 = vld [vmem:[#allocation7 + $0x84] ss:$8 sps:$4 sm:$0xff]  }
  0x6d   :  { %754 = vmatprep.subr.bf16.mxu0 %v1611_v28  ;;  %v1660_v28 = vld [vmem:[#allocation5 + $0x190] ss:$8 sps:$4 sm:$0xff]  }
  0x6f   :  { %1117 = vmatpush1.bf16.msra.mxu1 %v2061_v12 }
  0x70   :  { %755 = vmatpush1.bf16.msra.mxu0 %v1613_v29  ;;  %1118 = vmatprep.subr.bf16.mxu1 %v2063_v14  ;;  %v1665_v29 = vld [vmem:[#allocation5 + $0x1a4] ss:$8 sps:$4 sm:$0xff]  }
  0x71   :  { %756 = vmatprep.subr.bf16.mxu0 %v1614_v30  ;;  %v2086_v30 = vld [vmem:[#allocation7 + $0x80] ss:$8 sps:$4 sm:$0xff]  }
  0x73   :  { %1119 = vmatpush1.bf16.msra.mxu1 %v2067_v18 }
  0x74   :  { %757 = vmatpush1.bf16.msra.mxu0 %v1616_v31  ;;  %1120 = vmatprep.subr.bf16.mxu1 %v2069_v19  ;;  %v2089_v31 = vld [vmem:[#allocation7 + $0x94] ss:$8 sps:$4 sm:$0xff]  }
  0x75   :  { %758 = vmatprep.subr.bf16.mxu0 %v1617_v32  ;;  %v1663_v32 = vld [vmem:[#allocation5 + $0x1a0] ss:$8 sps:$4 sm:$0xff]  }
  0x77   :  { %1121 = vmatpush1.bf16.msra.mxu1 %v2073_v22 }
  0x78   :  { %759 = vmatpush1.bf16.msra.mxu0 %v1619_v33  ;;  %1122 = vmatprep.subr.bf16.mxu1 %v2075_v23  ;;  %v1668_v33 = vld [vmem:[#allocation5 + $0x1b4] ss:$8 sps:$4 sm:$0xff]  }
  0x79   :  { %760 = vmatprep.subr.bf16.mxu0 %v1620_v34  ;;  %v2092_v34 = vld [vmem:[#allocation7 + $0x90] ss:$8 sps:$4 sm:$0xff]  }
  0x7b   :  { %1123 = vmatpush1.bf16.msra.mxu1 %v2080_v26 }
  0x7c   :  { %761 = vmatpush1.bf16.msra.mxu0 %v1622_v35  ;;  %1124 = vmatprep.subr.bf16.mxu1 %v2083_v27  ;;  %v2095_v35 = vld [vmem:[#allocation7 + $0xa4] ss:$8 sps:$4 sm:$0xff]  }
  0x7d   :  { %762 = vmatprep.subr.bf16.mxu0 %v1623_v36  ;;  %v1666_v36 = vld [vmem:[#allocation5 + $0x1b0] ss:$8 sps:$4 sm:$0xff]  }
  0x7f   :  { %1125 = vmatpush1.bf16.msra.mxu1 %v2086_v30 }
  0x80   :  { %763 = vmatpush1.bf16.msra.mxu0 %v1625_v37  ;;  %1126 = vmatprep.subr.bf16.mxu1 %v2089_v31  ;;  %v1671_v37 = vld [vmem:[#allocation5 + $0x1c4] ss:$8 sps:$4 sm:$0xff]  }
  0x81   :  { %764 = vmatprep.subr.bf16.mxu0 %v1626_v39  ;;  %v2101_v39 = vld [vmem:[#allocation7 + $0xb4] ss:$8 sps:$4 sm:$0xff]  }
  0x83   :  { %1127 = vmatpush1.bf16.msra.mxu1 %v2092_v34 }
  0x84   :  { %765 = vmatpush1.bf16.msra.mxu0 %v1628_v40  ;;  %1128 = vmatprep.subr.bf16.mxu1 %v2095_v35  ;;  %v1669_v40 = vld [vmem:[#allocation5 + $0x1c0] ss:$8 sps:$4 sm:$0xff]  }
  0x85   :  { %766 = vmatprep.subr.bf16.mxu0 %v1629_v42  ;;  %v1674_v42 = vld [vmem:[#allocation5 + $0x1d4] ss:$8 sps:$4 sm:$0xff]  }
  0x87   :  { %1129 = vmatpush1.bf16.msra.mxu1 %v2098_v38 }
  0x88   :  { %767 = vmatpush1.bf16.msra.mxu0 %v1631_v43  ;;  %v2104_v43 = vld [vmem:[#allocation7 + $0xb0] ss:$8 sps:$4 sm:$0xff]   ;;  %1130 = vmatprep.subr.bf16.mxu1 %v2101_v39 }
  0x89   :  { %777 = vmatprep.subr.bf16.mxu0 %v1635_v45  ;;  %v1672_v45 = vld [vmem:[#allocation5 + $0x1d0] ss:$8 sps:$4 sm:$0xff]  }
  0x8b   :  { %769 = vmatmul.mubr.bf16.vlgmr.msra.gmra.mrb[0].mxu0 %v125_v47  ;;  %1131 = vmatpush1.bf16.msra.mxu1 %v2104_v43  ;;  %v2110_v47 = vld [vmem:[#allocation7 + $0xc0] ss:$8 sps:$4 sm:$0xff]  }
  0x8c   :  { %778 = vmatpush1.bf16.msra.mxu0 %v1633_v46  ;;  %809 = vmatprep.mubr.bf16.mxu0 %v128_v48  ;;  %v1677_v46 = vld [vmem:[#allocation5 + $0x1e4] ss:$8 sps:$4 sm:$0xff]   ;;  %v1675_v48 = vld [vmem:[#allocation5 + $0x1e0] ss:$8 sps:$4 sm:$0xff]  }
  0x8d   :  { %779 = vmatprep.subr.bf16.mxu0 %v1638_v50  ;;  %1132 = vmatprep.subr.bf16.mxu1 %v2107_v44  ;;  %v1680_v50 = vld [vmem:[#allocation5 + $0x1f4] ss:$8 sps:$4 sm:$0xff]  }
  0x8f   :  { %1133 = vmatpush1.bf16.msra.mxu1 %v2110_v47 }
  0x90   :  { %780 = vmatpush1.bf16.msra.mxu0 %v1636_v54  ;;  %v1683_v54 = vld [vmem:[#allocation5 + $0x204] ss:$8 sps:$4 sm:$0xff]  }
  0x91   :  { %781 = vmatprep.subr.bf16.mxu0 %v1641_v57  ;;  %v1681_v57 = vld [vmem:[#allocation5 + $0x200] ss:$8 sps:$4 sm:$0xff]  }
  0x94   :  { %782 = vmatpush1.bf16.msra.mxu0 %v1639_v62  ;;  %v1687_v62 = vld [vmem:[#allocation5 + $0x220] ss:$8 sps:$4 sm:$0xff]  }
  0x95   :  { %783 = vmatprep.subr.bf16.mxu0 %v1644_v63  ;;  %v1692_v63 = vld [vmem:[#allocation5 + $0x234] ss:$8 sps:$4 sm:$0xff]  }
  0x98   :  { %784 = vmatpush1.bf16.msra.mxu0 %v1642_v2  ;;  %v1690_v2 = vld [vmem:[#allocation5 + $0x230] ss:$8 sps:$4 sm:$0xff]  }
  0x99   :  { %785 = vmatprep.subr.bf16.mxu0 %v1647_v3  ;;  %v1695_v3 = vld [vmem:[#allocation5 + $0x244] ss:$8 sps:$4 sm:$0xff]  }
  0x9c   :  { %786 = vmatpush1.bf16.msra.mxu0 %v1645_v6  ;;  %v1698_v6 = vld [vmem:[#allocation5 + $0x254] ss:$8 sps:$4 sm:$0xff]  }
  0x9d   :  { %787 = vmatprep.subr.bf16.mxu0 %v1650_v7  ;;  %v1696_v7 = vld [vmem:[#allocation5 + $0x250] ss:$8 sps:$4 sm:$0xff]  }
  0xa0   :  { %788 = vmatpush1.bf16.msra.mxu0 %v1648_v8  ;;  %v1701_v8 = vld [vmem:[#allocation5 + $0x264] ss:$8 sps:$4 sm:$0xff]  }
  0xa1   :  { %789 = vmatprep.subr.bf16.mxu0 %v1653_v10  ;;  %v1699_v10 = vld [vmem:[#allocation5 + $0x260] ss:$8 sps:$4 sm:$0xff]  }
  0xa4   :  { %790 = vmatpush1.bf16.msra.mxu0 %v1651_v15  ;;  %v1704_v15 = vld [vmem:[#allocation5 + $0x274] ss:$8 sps:$4 sm:$0xff]  }
  0xa5   :  { %791 = vmatprep.subr.bf16.mxu0 %v1656_v17  ;;  %v1702_v17 = vld [vmem:[#allocation5 + $0x270] ss:$8 sps:$4 sm:$0xff]  }
  0xa8   :  { %792 = vmatpush1.bf16.msra.mxu0 %v1654_v20  ;;  %v2122_v20 = vld [vmem:[#allocation7 + $0xd0] ss:$8 sps:$4 sm:$0xff]  }
  0xa9   :  { %793 = vmatprep.subr.bf16.mxu0 %v1659_v21  ;;  %v2124_v21 = vld [vmem:[#allocation7 + $0xd4] ss:$8 sps:$4 sm:$0xff]  }
  0xaa   :  { %1134 = vmatprep.subr.bf16.mxu1 %v2124_v21 }
  0xab   :  { %1135 = vmatpush1.bf16.msra.mxu1 %v2122_v20 }
  0xac   :  { %794 = vmatpush1.bf16.msra.mxu0 %v1657_v24  ;;  %v1707_v24 = vld [vmem:[#allocation5 + $0x284] ss:$8 sps:$4 sm:$0xff]  }
  0xad   :  { %795 = vmatprep.subr.bf16.mxu0 %v1662_v25  ;;  %v1705_v25 = vld [vmem:[#allocation5 + $0x280] ss:$8 sps:$4 sm:$0xff]  }
  0xb0   :  { %796 = vmatpush1.bf16.msra.mxu0 %v1660_v28  ;;  %v1710_v28 = vld [vmem:[#allocation5 + $0x294] ss:$8 sps:$4 sm:$0xff]  }
  0xb1   :  { %797 = vmatprep.subr.bf16.mxu0 %v1665_v29  ;;  %v1708_v29 = vld [vmem:[#allocation5 + $0x290] ss:$8 sps:$4 sm:$0xff]  }
  0xb4   :  { %798 = vmatpush1.bf16.msra.mxu0 %v1663_v32  ;;  %v1713_v32 = vld [vmem:[#allocation5 + $0x2a4] ss:$8 sps:$4 sm:$0xff]  }
  0xb5   :  { %799 = vmatprep.subr.bf16.mxu0 %v1668_v33  ;;  %v1711_v33 = vld [vmem:[#allocation5 + $0x2a0] ss:$8 sps:$4 sm:$0xff]  }
  0xb8   :  { %800 = vmatpush1.bf16.msra.mxu0 %v1666_v36  ;;  %v1716_v36 = vld [vmem:[#allocation5 + $0x2b4] ss:$8 sps:$4 sm:$0xff]  }
  0xb9   :  { %801 = vmatprep.subr.bf16.mxu0 %v1671_v37  ;;  %v1714_v37 = vld [vmem:[#allocation5 + $0x2b0] ss:$8 sps:$4 sm:$0xff]  }
  0xbc   :  { %802 = vmatpush1.bf16.msra.mxu0 %v1669_v40  ;;  %v1719_v40 = vld [vmem:[#allocation5 + $0x2c4] ss:$8 sps:$4 sm:$0xff]  }
  0xbd   :  { %803 = vmatprep.subr.bf16.mxu0 %v1674_v42  ;;  %v1717_v42 = vld [vmem:[#allocation5 + $0x2c0] ss:$8 sps:$4 sm:$0xff]  }
  0xc0   :  { %804 = vmatpush1.bf16.msra.mxu0 %v1672_v45  ;;  %v1722_v45 = vld [vmem:[#allocation5 + $0x2d4] ss:$8 sps:$4 sm:$0xff]  }
  0xc1   :  { %805 = vmatprep.subr.bf16.mxu0 %v1677_v46  ;;  %v1720_v46 = vld [vmem:[#allocation5 + $0x2d0] ss:$8 sps:$4 sm:$0xff]  }
  0xc4   :  { %806 = vmatpush1.bf16.msra.mxu0 %v1675_v48  ;;  %v1725_v48 = vld [vmem:[#allocation5 + $0x2e4] ss:$8 sps:$4 sm:$0xff]  }
  0xc5   :  { %807 = vmatprep.subr.bf16.mxu0 %v1680_v50  ;;  %v1723_v50 = vld [vmem:[#allocation5 + $0x2e0] ss:$8 sps:$4 sm:$0xff]  }
  0xc8   :  { %808 = vmatpush1.bf16.msra.mxu0 %v1678_v51  ;;  %v1730_v51 = vld [vmem:[#allocation5 + $0x2f4] ss:$8 sps:$4 sm:$0xff]  }
  0xc9   :  { %818 = vmatprep.subr.bf16.mxu0 %v1683_v54  ;;  %v129_v54 = vpack.c.bf16 %v2115_v49, %v2115_v49  ;;  %v230_v49 = vld [vmem:[%s2183_s2] sm:$0x3] }
  0xcb   :  { %810 = vmatmul.mubr.bf16.vlgmr.msra.gmra.mrb[0].mxu0 %v127_v55  ;;  %v1777_v55 = vld [vmem:[#allocation7 + $0xe4] ss:$8 sps:$4 sm:$0xff]  }
  0xcc   :  { %819 = vmatpush1.bf16.msra.mxu0 %v1681_v57  ;;  %850 = vmatprep.mubr.bf16.mxu0 %v130_v58  ;;  %v1775_v57 = vld [vmem:[#allocation7 + $0xe0] ss:$8 sps:$4 sm:$0xff]   ;;  %v1780_v58 = vld [vmem:[#allocation7 + $0xf4] ss:$8 sps:$4 sm:$0xff]  }
  0xcd   :  { %820 = vmatprep.subr.bf16.mxu0 %v1686_v16  ;;  %1136 = vmatprep.subr.bf16.mxu1 %v1777_v55 }
  0xce   :  { %1137 = vmatpush1.bf16.msra.mxu1 %v1775_v57 }
  0xcf   :  { %1138 = vmatprep.subr.bf16.mxu1 %v1780_v58 }
  0xd0   :  { %821 = vmatpush1.bf16.msra.mxu0 %v1684_v53  ;;  %v1778_v53 = vld [vmem:[#allocation7 + $0xf0] ss:$8 sps:$4 sm:$0xff]  }
  0xd1   :  { %822 = vmatprep.subr.bf16.mxu0 %v1689_v60 }
  0xd2   :  { %1139 = vmatpush1.bf16.msra.mxu1 %v1778_v53 }
  0xd3   :  { %1153 = vmatprep.subr.bf16.mxu1 %v2035_v56 }
  0xd4   :  { %823 = vmatpush1.bf16.msra.mxu0 %v1687_v62 }
  0xd5   :  { %824 = vmatprep.subr.bf16.mxu0 %v1692_v63 }
  0xd8   :  { %825 = vmatpush1.bf16.msra.mxu0 %v1690_v2  ;;  %v234_v2 = vsub.s32 0, %v2020_v13 }
  0xd9   :  { %826 = vmatprep.subr.bf16.mxu0 %v1695_v3  ;;  %v238_v3 = vsub.s32 1, %v2020_v13  ;;  %v1781_v13 = vld [vmem:[#allocation8 + $0x40] sm:$0xff]  }
  0xdc   :  { %827 = vmatpush1.bf16.msra.mxu0 %v1693_v41  ;;  %v235_v41 = vrot.slane %v230_v49, %v234_v2 }
  0xdd   :  { %828 = vmatprep.subr.bf16.mxu0 %v1698_v6  ;;  %v239_v6 = vrot.slane %v230_v49, %v238_v3 }
  0xe0   :  { %829 = vmatpush1.bf16.msra.mxu0 %v1696_v7 }
  0xe1   :  { %830 = vmatprep.subr.bf16.mxu0 %v1701_v8 }
  0xe4   :  { %831 = vmatpush1.bf16.msra.mxu0 %v1699_v10 }
  0xe5   :  { %832 = vmatprep.subr.bf16.mxu0 %v1704_v15 }
  0xe8   :  { %833 = vmatpush1.bf16.msra.mxu0 %v1702_v17 }
  0xe9   :  { %834 = vmatprep.subr.bf16.mxu0 %v1707_v24 }
  0xec   :  { %835 = vmatpush1.bf16.msra.mxu0 %v1705_v25 }
  0xed   :  { %836 = vmatprep.subr.bf16.mxu0 %v1710_v28 }
  0xf0   :  { %837 = vmatpush1.bf16.msra.mxu0 %v1708_v29 }
  0xf1   :  { %838 = vmatprep.subr.bf16.mxu0 %v1713_v32 }
  0xf4   :  { %839 = vmatpush1.bf16.msra.mxu0 %v1711_v33 }
  0xf5   :  { %840 = vmatprep.subr.bf16.mxu0 %v1716_v36  ;;  %v1796_v36 = vld [vmem:[#allocation8 + $0x38] sm:$0xff]  }
  0xf8   :  { %841 = vmatpush1.bf16.msra.mxu0 %v1714_v37 }
  0xf9   :  { %842 = vmatprep.subr.bf16.mxu0 %v1719_v40 }
  0xfc   :  { %843 = vmatpush1.bf16.msra.mxu0 %v1717_v42 }
  0xfd   :  { %844 = vmatprep.subr.bf16.mxu0 %v1722_v45 }
 0x100   :  { %845 = vmatpush1.bf16.msra.mxu0 %v1720_v46 }
 0x101   :  { %846 = vmatprep.subr.bf16.mxu0 %v1725_v48 }
 0x104   :  { %847 = vmatpush1.bf16.msra.mxu0 %v1723_v50 }
 0x105   :  { %848 = vmatprep.subr.bf16.mxu0 %v1730_v51 }
 0x108   :  { %849 = vmatpush1.bf16.msra.mxu0 %v1728_v52 }
 0x10b   :  { %851 = vmatmul.mubr.bf16.vlgmr.msra.gmra.mrb[0].mxu0 %v129_v54 }
 0x131   :  { %v893_v16 = vpop.f32.mrb[0].mxu1 }
 0x132   :  { %v895_v60 = vpop.f32.mrb[1].mxu1 }
 0x133   :  { %v897_v62 = vpop.f32.mrb[2].mxu1 }
 0x134   :  { %v898_v63 = vpop.f32.mrb[3].mxu1 }
 0x1de   :  { %v852_v7 = vpop.f32.mrb[0].mxu0 }
 0x1df   :  { %v1561_v8 = vadd.f32 %v852_v7, %v235_v41  ;;  %v854_v10 = vpop.f32.mrb[1].mxu0 }
 0x1e0   :  { %v1563_v15 = vadd.f32 %v854_v10, %v239_v6  ;;  %v856_v17 = vpop.f32.mrb[2].mxu0 }
 0x1e1   :  { %v1562_v24 = vadd.f32 %v1561_v8, %v893_v16  ;;  %v857_v25 = vpop.f32.mrb[3].mxu0 }
 0x1e2   :  { %v1564_v28 = vadd.f32 %v1563_v15, %v895_v60 }
 0x1e3   :  { %v900_v29 = vmax.f32 %v1562_v24, 0.0 }
 0x1e4   :  { %v901_v56 = vmax.f32 %v1564_v28, 0.0 }
 0x1e5   :  { %v902_v33 = vpack.c.bf16 %v900_v29, %v900_v29 }
 0x1e6   :  { %v903_v32 = vpack.c.bf16 %v901_v56, %v901_v56 }
 0x1e8   :  { %1140 = vmatprep.mubr.bf16.mxu1 %v903_v32 }
 0x1e9   :  { %1141 = vmatmul.mubr.bf16.vlgmr.msra.gmra.mrb[4].mxu1 %v902_v33 }
 0x1ea   :  { %1154 = vmatpush1.bf16.msra.mxu1 %v2038_v59  ;;  %v936_v59 = vld [vmem:[%s2185_s4] sm:$0x3] }
 0x1eb   :  { %1155 = vmatprep.subr.bf16.mxu1 %v2041_v61  ;;  %v941_v61 = vrot.slane %v936_v59, %v234_v2 }
 0x1ee   :  { %1156 = vmatpush1.bf16.msra.mxu1 %v2044_v0  ;;  %v945_v0 = vrot.slane %v936_v59, %v238_v3 }
 0x1ef   :  { %1157 = vmatprep.subr.bf16.mxu1 %v2047_v1 }
 0x1f2   :  { %1158 = vmatpush1.bf16.msra.mxu1 %v2050_v4 }
 0x1f3   :  { %1159 = vmatprep.subr.bf16.mxu1 %v2053_v5 }
 0x1f6   :  { %1160 = vmatpush1.bf16.msra.mxu1 %v2056_v9 }
 0x1f7   :  { %1161 = vmatprep.subr.bf16.mxu1 %v2059_v11 }
 0x1fa   :  { %1162 = vmatpush1.bf16.msra.mxu1 %v2061_v12 }
 0x1fb   :  { %1163 = vmatprep.subr.bf16.mxu1 %v2063_v14 }
 0x1fe   :  { %1164 = vmatpush1.bf16.msra.mxu1 %v2067_v18 }
 0x1ff   :  { %1165 = vmatprep.subr.bf16.mxu1 %v2069_v19 }
 0x202   :  { %1166 = vmatpush1.bf16.msra.mxu1 %v2073_v22  ;;  %v1782_v22 = vld [vmem:[#allocation8] sm:$0xff]  }
 0x203   :  { %1167 = vmatprep.subr.bf16.mxu1 %v2075_v23 }
 0x206   :  { %1168 = vmatpush1.bf16.msra.mxu1 %v2080_v26  ;;  %v1783_v26 = vld [vmem:[#allocation8 + $0x48] sm:$0xff]  }
 0x207   :  { %1169 = vmatprep.subr.bf16.mxu1 %v2083_v27  ;;  %v1784_v27 = vld [vmem:[#allocation8 + $0x8] sm:$0xff]  }
 0x20a   :  { %1170 = vmatpush1.bf16.msra.mxu1 %v2086_v30  ;;  %v1785_v30 = vld [vmem:[#allocation8 + $0x50] sm:$0xff]  }
 0x20b   :  { %1171 = vmatprep.subr.bf16.mxu1 %v2089_v31  ;;  %v1786_v31 = vld [vmem:[#allocation8 + $0x10] sm:$0xff]  }
 0x20e   :  { %1172 = vmatpush1.bf16.msra.mxu1 %v2092_v34  ;;  %v1787_v34 = vld [vmem:[#allocation8 + $0x58] sm:$0xff]  }
 0x20f   :  { %1173 = vmatprep.subr.bf16.mxu1 %v2095_v35  ;;  %v1788_v35 = vld [vmem:[#allocation8 + $0x18] sm:$0xff]  }
 0x212   :  { %1174 = vmatpush1.bf16.msra.mxu1 %v2098_v38  ;;  %v1789_v38 = vld [vmem:[#allocation8 + $0x60] sm:$0xff]  }
 0x213   :  { %1175 = vmatprep.subr.bf16.mxu1 %v2101_v39  ;;  %v1790_v39 = vld [vmem:[#allocation8 + $0x20] sm:$0xff]  }
 0x216   :  { %1176 = vmatpush1.bf16.msra.mxu1 %v2104_v43  ;;  %v1791_v43 = vld [vmem:[#allocation8 + $0x68] sm:$0xff]  }
 0x217   :  { %1177 = vmatprep.subr.bf16.mxu1 %v2107_v44  ;;  %v1792_v44 = vld [vmem:[#allocation8 + $0x28] sm:$0xff]  }
 0x21a   :  { %1178 = vmatpush1.bf16.msra.mxu1 %v2110_v47  ;;  %v1793_v47 = vld [vmem:[#allocation8 + $0x70] sm:$0xff]  }
 0x21b   :  { %1179 = vmatprep.subr.bf16.mxu1 %v2124_v21  ;;  %v1795_v21 = vld [vmem:[#allocation8 + $0x78] sm:$0xff]  }
 0x21e   :  { %1180 = vmatpush1.bf16.msra.mxu1 %v2122_v20  ;;  %v1794_v20 = vld [vmem:[#allocation8 + $0x30] sm:$0xff]  }
 0x21f   :  { %1181 = vmatprep.subr.bf16.mxu1 %v1777_v55 }
 0x222   :  { %1182 = vmatpush1.bf16.msra.mxu1 %v1775_v57  ;;  %v1522_v57 = vld [vmem:[%s2187_s6] ss:$0 sm:$0xff] }
 0x223   :  { %1183 = vmatprep.subr.bf16.mxu1 %v1780_v58 }
 0x226   :  { %1184 = vmatpush1.bf16.msra.mxu1 %v1778_v53 }
 0x227   :  { %1539 = vmatprep.subr.bf16.mxu1 %v1781_v13 }
 0x2bc   :  { %v1142_v1 = vpop.f32.mrb[4].mxu1 }
 0x2bd   :  { %v1143_v4 = vadd.f32 %v1142_v1, %v941_v61  ;;  %v1144_v5 = vpop.f32.mrb[5].mxu1 }
 0x2be   :  { %v1145_v9 = vadd.f32 %v1144_v5, %v945_v0  ;;  %v1146_v11 = vpop.f32.mrb[6].mxu1 }
 0x2bf   :  { %v1149_v12 = vmax.f32 %v1143_v4, 0.0  ;;  %v1147_v14 = vpop.f32.mrb[7].mxu1 }
 0x2c0   :  { %v1150_v18 = vmax.f32 %v1145_v9, 0.0 }
 0x2c1   :  { %v1151_v23 = vpack.c.bf16 %v1149_v12, %v1149_v12 }
 0x2c2   :  { %v1152_v19 = vpack.c.bf16 %v1150_v18, %v1150_v18 }
 0x2c4   :  { %1185 = vmatprep.mubr.bf16.mxu1 %v1152_v19 }
 0x2c5   :  { %1186 = vmatmul.mubr.bf16.vlgmr.msra.gmra.mrb[8].mxu1 %v1151_v23 }
 0x2c6   :  { %1540 = vmatpush3.bf16.msra.mxu1 %v1782_v22 }
 0x2c7   :  { %1541 = vmatprep.subr.bf16.mxu1 %v1783_v26 }
 0x2ca   :  { %1542 = vmatpush3.bf16.msra.mxu1 %v1784_v27 }
 0x2cb   :  { %1543 = vmatprep.subr.bf16.mxu1 %v1785_v30 }
 0x2ce   :  { %1544 = vmatpush3.bf16.msra.mxu1 %v1786_v31 }
 0x2cf   :  { %1545 = vmatprep.subr.bf16.mxu1 %v1787_v34 }
 0x2d2   :  { %1546 = vmatpush3.bf16.msra.mxu1 %v1788_v35 }
 0x2d3   :  { %1547 = vmatprep.subr.bf16.mxu1 %v1789_v38 }
 0x2d6   :  { %1548 = vmatpush3.bf16.msra.mxu1 %v1790_v39 }
 0x2d7   :  { %1549 = vmatprep.subr.bf16.mxu1 %v1791_v43 }
 0x2da   :  { %1550 = vmatpush3.bf16.msra.mxu1 %v1792_v44 }
 0x2db   :  { %1551 = vmatprep.subr.bf16.mxu1 %v1793_v47 }
 0x2de   :  { %1552 = vmatpush3.bf16.msra.mxu1 %v1794_v20 }
 0x2df   :  { %1553 = vmatprep.subr.bf16.mxu1 %v1795_v21 }
 0x2e2   :  { %1554 = vmatpush3.bf16.msra.mxu1 %v1796_v36 }
 0x398   :  { %v1187_v37 = vpop.f32.mrb[8].mxu1 }
 0x399   :  { %v1188_v40 = vadd.f32 %v1187_v37, %v941_v61  ;;  %v1189_v42 = vpop.f32.mrb[9].mxu1 }
 0x39a   :  { %v1190_v45 = vadd.f32 %v1189_v42, %v945_v0  ;;  %v1191_v46 = vpop.f32.mrb[10].mxu1 }
 0x39b   :  { %v1194_v48 = vmax.f32 %v1188_v40, 0.0  ;;  %v1192_v50 = vpop.f32.mrb[11].mxu1 }
 0x39c   :  { %v1195_v51 = vmax.f32 %v1190_v45, 0.0 }
 0x39d   :  { %v1196_v54 = vpack.c.bf16 %v1194_v48, %v1194_v48 }
 0x39e   :  { %v1197_v52 = vpack.c.bf16 %v1195_v51, %v1195_v51 }
 0x3a0   :  { %1365 = vmatprep.mubr.bf16.mxu1 %v1197_v52 }
 0x3a1   :  { %1366 = vmatmul.mubr.bf16.vlgmr.msra.gmra.mrb[12].mxu1 %v1196_v54 }
 0x474   :  { %v1555_v55 = vpop.f32.mrb[12].mxu1 }
 0x475   :  { %v1556_v58 = vpop.f32.mrb[13].mxu1 }
 0x476   :  { %v1557_v16 = vadd.f32 %v1556_v58, %v1555_v55  ;;  %v1558_v53 = vpop.f32.mrb[14].mxu1 }
 0x477   :  { %v1559_v60 = vpop.f32.mrb[15].mxu1 }
 0x478   :  { %v1368_v62 = vadd.f32 %v1557_v16, %v1522_v57 }
 0x47a   :  { %1373 = vst [vmem:[#allocation10] sm:$0x3] %v1368_v62 }
 0x47b   :  { %1896 = shalt.err (!%p1893_p8)
}
 0x47c   :  { %s1897_s6 = scalar_lea.hbm %s2188_s7, 32 }
 0x47d   :  { %p1898_p9 = scmp.ne.s32.totalorder %s2188_s7, %s1897_s6  ;;  %p1901_p10 = scmp.lt.u32.totalorder %s1897_s6, %s2188_s7 }
 0x47f   :  { %p1903_p11 = pnand %p1901_p10, %p1898_p9 }
 0x481   :  { %1906 = shalt.err (!%p1903_p11)
}
 0x482   :  { %1383 = dma.vmem_to_hbm [thread:$0]  %s1381_s30, 32, %s2188_s7, [#allocation4]  }
 0x483   :  { %1913 = dma.done.wait [#allocation4], 32  }
 0x484   :  { %1914 = vsyncadd [#allocation4], 4294967264 }
 0x485   :  { %1387 = vsyncpa [#allocation3], 1 }
 0x486   :  { %1388 = vsyncpa [#allocation6], 1 }
 0x487   :  { %1389 = vsyncpa [#allocation9], 1 }
 0x488   :  { %1390 = vsyncpa [#allocation4], 1 }

</bundles_post_ra>
